<compile_context>
chip_gen: v5e
topology: v5e:2x2
jax: 0.10.0
libtpu: 0.0.40
codegen_flags: <defaults>
</compile_context>

<pallas_src>
import jax
import jax.numpy as jnp
from jax import lax
from jax.experimental import pallas as pl
from jax.experimental.pallas import tpu as pltpu


def _sigmoid(x):
    # Explicit form: exp goes to the EUP, cheap and always lowerable.
    return 1.0 / (1.0 + jnp.exp(-x))


def _lstm_final_cell_kernel(xproj_ref, whh_ref, len_ref, c_out_ref,
                            h_ref, c_ref):
    # xproj_ref: (T, B, 4H)  precomputed x_t @ W_ih^T + b_ih + b_hh
    # whh_ref:   (H, 4H)     recurrent weight, transposed (lane axis = 4H)
    # len_ref:   (B, 1)      int32 valid lengths
    # c_out_ref: (B, H)      final cell state  (== cn.squeeze(0))
    # h_ref/c_ref: (B, H)    VMEM scratch carrying the recurrence state
    T = xproj_ref.shape[0]
    H = whh_ref.shape[0]

    whh = whh_ref[...]                       # resident for the whole recurrence
    lengths = len_ref[...]                   # (B, 1) int32

    h_ref[...] = jnp.zeros_like(h_ref)
    c_ref[...] = jnp.zeros_like(c_ref)

    @pl.loop(0, T)
    def _(t):
        h = h_ref[...]
        c = c_ref[...]
        gates = xproj_ref[t] + jnp.dot(
            h, whh, preferred_element_type=jnp.float32)         # (B, 4H)
        i = _sigmoid(gates[:, 0 * H:1 * H])
        f = _sigmoid(gates[:, 1 * H:2 * H])
        g = jnp.tanh(gates[:, 2 * H:3 * H])
        o = _sigmoid(gates[:, 3 * H:4 * H])
        c_new = f * c + i * g
        h_new = o * jnp.tanh(c_new)
        valid = t < lengths                  # (B, 1) packed-sequence mask
        h_ref[...] = jnp.where(valid, h_new, h)
        c_ref[...] = jnp.where(valid, c_new, c)

    c_out_ref[...] = c_ref[...].astype(c_out_ref.dtype)


def language_model_forward(captions, lengths, emb_table, w_ih, b_ih, w_hh, b_hh):
    """captions: (B, T) int32 token ids
       lengths:  (B,)   int32 valid lengths (as passed to pack_padded_sequence)
       emb_table:(V, E);  w_ih:(4H, E)  b_ih:(4H,)  w_hh:(4H, H)  b_hh:(4H,)
       Returns (B, H) == cn.squeeze(0) of the PyTorch module (num_layers=1)."""
    B, T = captions.shape
    H = w_hh.shape[1]
    G = 4 * H

    # Hoisted non-recurrent work: embedding gather + input projection as one big
    # lane-dense GEMM, produced directly time-major (only the tiny int32 caption
    # matrix is transposed, never the f32 activations).
    # TODO(synk): the data-dependent embedding gather stays in XLA; a Pallas
    # version would need manual DMA gather, which is not worth it at these sizes.
    emb_t = jnp.take(emb_table, captions.T, axis=0)              # (T, B, E)
    x_proj = (jnp.einsum('tbe,ge->tbg', emb_t, w_ih)
              + (b_ih + b_hh)).astype(jnp.float32)               # (T, B, 4H)

    whh_t = jnp.transpose(w_hh).astype(jnp.float32)              # (H, 4H)
    len2d = lengths.astype(jnp.int32).reshape(B, 1)

    return pl.pallas_call(
        _lstm_final_cell_kernel,
        out_shape=jax.ShapeDtypeStruct((B, H), jnp.float32),
        grid_spec=pltpu.PrefetchScalarGridSpec(
            num_scalar_prefetch=0,
            grid=(1,),
            in_specs=[
                pl.BlockSpec((T, B, G), lambda i: (0, 0, 0)),    # x_proj
                pl.BlockSpec((H, G),    lambda i: (0, 0)),       # W_hh^T
                pl.BlockSpec((B, 1),    lambda i: (0, 0)),       # lengths
            ],
            out_specs=pl.BlockSpec((B, H), lambda i: (0, 0)),
            scratch_shapes=[pltpu.VMEM((B, H), jnp.float32),     # h state
                            pltpu.VMEM((B, H), jnp.float32)],    # c state
        ),
        compiler_params=pltpu.CompilerParams(
            dimension_semantics=("arbitrary",)),
    )(x_proj, whh_t, len2d)


def _reference(captions, lengths, emb_table, w_ih, b_ih, w_hh, b_hh):
    """Plain-JAX reference matching PyTorch's packed-LSTM forward (num_layers=1)."""
    B, T = captions.shape
    H = w_hh.shape[1]
    emb = jnp.take(emb_table, captions, axis=0)                  # (B, T, E)
    mask = jnp.arange(T)[None, :] < lengths[:, None]             # (B, T)

    def cell(carry, xs):
        h, c = carry
        x_t, m_t = xs                                            # (B,E), (B,)
        gates = x_t @ w_ih.T + b_ih + h @ w_hh.T + b_hh          # (B, 4H)
        i, f, g, o = jnp.split(gates, 4, axis=1)
        i = jax.nn.sigmoid(i)
        f = jax.nn.sigmoid(f)
        g = jnp.tanh(g)
        o = jax.nn.sigmoid(o)
        c_new = f * c + i * g
        h_new = o * jnp.tanh(c_new)
        m = m_t[:, None]
        return (jnp.where(m, h_new, h), jnp.where(m, c_new, c)), None

    init = (jnp.zeros((B, H), jnp.float32), jnp.zeros((B, H), jnp.float32))
    (h_f, c_f), _ = lax.scan(cell, init,
                             (jnp.transpose(emb, (1, 0, 2)), mask.T))
    return c_f


if __name__ == "__main__":
    # Small, module-consistent shapes:
    #   embed_size=32, hidden_size=32, vocab_size=50, num_layers=1,
    #   batch=2, seq_len=8, lengths sorted descending (pack_padded_sequence).
    B, T = 2, 8
    E, H, V = 32, 32, 50

    key = jax.random.PRNGKey(0)
    k_cap, k_emb, k_wih, k_bih, k_whh, k_bhh = jax.random.split(key, 6)

    captions = jax.random.randint(k_cap, (B, T), 0, V, dtype=jnp.int32)
    lengths = jnp.array([8, 5], dtype=jnp.int32)                 # sorted descending

    emb_table = jax.random.normal(k_emb, (V, E), jnp.float32) * 0.5
    w_ih = jax.random.normal(k_wih, (4 * H, E), jnp.float32) * 0.1
    b_ih = jax.random.normal(k_bih, (4 * H,), jnp.float32) * 0.1
    w_hh = jax.random.normal(k_whh, (4 * H, H), jnp.float32) * 0.1
    b_hh = jax.random.normal(k_bhh, (4 * H,), jnp.float32) * 0.1

    out = language_model_forward(captions, lengths, emb_table,
                                 w_ih, b_ih, w_hh, b_hh)
    out = jax.block_until_ready(out)

    ref = _reference(captions, lengths, emb_table, w_ih, b_ih, w_hh, b_hh)
    assert out.shape == (B, H)
    assert jnp.allclose(out, ref, atol=1e-4, rtol=1e-4), "mismatch vs reference"

    print("KERNEL_OK")
</pallas_src>

<mosaic_0001>
module attributes {stable_mosaic.version = 11 : i64} {
  func.func @_lstm_final_cell_kernel(%arg0: i32, %arg1: memref<8x2x128xf32, #tpu.memory_space<vmem>>, %arg2: memref<32x128xf32, #tpu.memory_space<vmem>>, %arg3: memref<2x1xi32, #tpu.memory_space<vmem>>, %arg4: memref<2x32xf32, #tpu.memory_space<vmem>>, %arg5: memref<2x32xf32, #tpu.memory_space<vmem>>, %arg6: memref<2x32xf32, #tpu.memory_space<vmem>>) attributes {dimension_semantics = [#tpu.dimension_semantics<arbitrary>], iteration_bounds = array<i64: 1>, scalar_prefetch = 0 : i64, scratch_operands = 2 : i64, tpu.core_type = #tpu.core_type<tc>, window_params = [{pipeline_mode = #tpu.pipeline_mode<synchronous>, transform_indices = @transform_0, window_bounds = array<i64: 8, 2, 128>}, {pipeline_mode = #tpu.pipeline_mode<synchronous>, transform_indices = @transform_1, window_bounds = array<i64: 32, 128>}, {pipeline_mode = #tpu.pipeline_mode<synchronous>, transform_indices = @transform_2, window_bounds = array<i64: 2, 1>}, {pipeline_mode = #tpu.pipeline_mode<synchronous>, transform_indices = @transform_3, window_bounds = array<i64: 2, 32>}]} {
    %c0 = arith.constant 0 : index
    %c0_0 = arith.constant 0 : index
    %0 = vector.load %arg2[%c0, %c0_0] : memref<32x128xf32, #tpu.memory_space<vmem>>, vector<32x128xf32>
    %c0_1 = arith.constant 0 : index
    %c0_2 = arith.constant 0 : index
    %1 = vector.load %arg3[%c0_1, %c0_2] : memref<2x1xi32, #tpu.memory_space<vmem>>, vector<2x1xi32>
    %cst = arith.constant 0.000000e+00 : f32
    %2 = vector.broadcast %cst : f32 to vector<2x32xf32>
    %c0_3 = arith.constant 0 : index
    %c0_4 = arith.constant 0 : index
    %3 = vector.load %arg5[%c0_3, %c0_4] : memref<2x32xf32, #tpu.memory_space<vmem>>, vector<2x32xf32>
    tpu.vector_store %arg5[%c0_3, %c0_4], %2 {strides = array<i32>} : memref<2x32xf32, #tpu.memory_space<vmem>>, vector<2x32xf32>,
    %cst_5 = arith.constant 0.000000e+00 : f32
    %4 = vector.broadcast %cst_5 : f32 to vector<2x32xf32>
    %c0_6 = arith.constant 0 : index
    %c0_7 = arith.constant 0 : index
    %5 = vector.load %arg6[%c0_6, %c0_7] : memref<2x32xf32, #tpu.memory_space<vmem>>, vector<2x32xf32>
    tpu.vector_store %arg6[%c0_6, %c0_7], %4 {strides = array<i32>} : memref<2x32xf32, #tpu.memory_space<vmem>>, vector<2x32xf32>,
    %c0_i32 = arith.constant 0 : i32
    %c8_i32 = arith.constant 8 : i32
    %6 = arith.addi %c0_i32, %c8_i32 : i32
    %c1_i32 = arith.constant 1 : i32
    scf.for %arg7 = %c0_i32 to %6 step %c1_i32  : i32 {
      %c1_i32_13 = arith.constant 1 : i32
      %9 = arith.muli %arg7, %c1_i32_13 : i32
      %c0_i32_14 = arith.constant 0 : i32
      %10 = arith.addi %c0_i32_14, %9 : i32
      %c0_15 = arith.constant 0 : index
      %c0_16 = arith.constant 0 : index
      %11 = vector.load %arg5[%c0_15, %c0_16] : memref<2x32xf32, #tpu.memory_space<vmem>>, vector<2x32xf32>
      %c0_17 = arith.constant 0 : index
      %c0_18 = arith.constant 0 : index
      %12 = vector.load %arg6[%c0_17, %c0_18] : memref<2x32xf32, #tpu.memory_space<vmem>>, vector<2x32xf32>
      %13 = arith.index_cast %10 : i32 to index
      %c0_19 = arith.constant 0 : index
      %c0_20 = arith.constant 0 : index
      %14 = vector.load %arg1[%13, %c0_19, %c0_20] : memref<8x2x128xf32, #tpu.memory_space<vmem>>, vector<1x2x128xf32>
      %15 = vector.shape_cast %14 : vector<1x2x128xf32> to vector<2x128xf32>
      %cst_21 = arith.constant dense<0.000000e+00> : vector<2x128xf32>
      %16 = tpu.matmul %11, %0, %cst_21 {dimension_numbers = #tpu.dot_dimension_numbers<[1], [0], [0], [1], [0, 0, 1, 1], [], []>} : vector<2x32xf32>, vector<32x128xf32>, vector<2x128xf32> -> vector<2x128xf32>
      %17 = arith.addf %15, %16 : vector<2x128xf32>
      %18 = vector.extract_strided_slice %17 {offsets = [0, 0], sizes = [2, 32], strides = [1, 1]} : vector<2x128xf32> to vector<2x32xf32>
      %cst_22 = arith.constant 0.000000e+00 : f32
      %19 = vector.broadcast %cst_22 : f32 to vector<2x32xf32>
      %20 = arith.subf %19, %18 : vector<2x32xf32>
      %21 = math.exp %20 : vector<2x32xf32>
      %cst_23 = arith.constant 1.000000e+00 : f32
      %22 = vector.broadcast %cst_23 : f32 to vector<2x32xf32>
      %23 = arith.addf %22, %21 : vector<2x32xf32>
      %cst_24 = arith.constant 1.000000e+00 : f32
      %24 = vector.broadcast %cst_24 : f32 to vector<2x32xf32>
      %25 = arith.divf %24, %23 : vector<2x32xf32>
      %26 = vector.extract_strided_slice %17 {offsets = [0, 32], sizes = [2, 32], strides = [1, 1]} : vector<2x128xf32> to vector<2x32xf32>
      %cst_25 = arith.constant 0.000000e+00 : f32
      %27 = vector.broadcast %cst_25 : f32 to vector<2x32xf32>
      %28 = arith.subf %27, %26 : vector<2x32xf32>
      %29 = math.exp %28 : vector<2x32xf32>
      %cst_26 = arith.constant 1.000000e+00 : f32
      %30 = vector.broadcast %cst_26 : f32 to vector<2x32xf32>
      %31 = arith.addf %30, %29 : vector<2x32xf32>
      %cst_27 = arith.constant 1.000000e+00 : f32
      %32 = vector.broadcast %cst_27 : f32 to vector<2x32xf32>
      %33 = arith.divf %32, %31 : vector<2x32xf32>
      %34 = vector.extract_strided_slice %17 {offsets = [0, 64], sizes = [2, 32], strides = [1, 1]} : vector<2x128xf32> to vector<2x32xf32>
      %35 = math.tanh %34 : vector<2x32xf32>
      %36 = vector.extract_strided_slice %17 {offsets = [0, 96], sizes = [2, 32], strides = [1, 1]} : vector<2x128xf32> to vector<2x32xf32>
      %cst_28 = arith.constant 0.000000e+00 : f32
      %37 = vector.broadcast %cst_28 : f32 to vector<2x32xf32>
      %38 = arith.subf %37, %36 : vector<2x32xf32>
      %39 = math.exp %38 : vector<2x32xf32>
      %cst_29 = arith.constant 1.000000e+00 : f32
      %40 = vector.broadcast %cst_29 : f32 to vector<2x32xf32>
      %41 = arith.addf %40, %39 : vector<2x32xf32>
      %cst_30 = arith.constant 1.000000e+00 : f32
      %42 = vector.broadcast %cst_30 : f32 to vector<2x32xf32>
      %43 = arith.divf %42, %41 : vector<2x32xf32>
      %44 = arith.mulf %33, %12 : vector<2x32xf32>
      %45 = arith.mulf %25, %35 : vector<2x32xf32>
      %46 = arith.addf %44, %45 : vector<2x32xf32>
      %47 = math.tanh %46 : vector<2x32xf32>
      %48 = arith.mulf %43, %47 : vector<2x32xf32>
      %49 = vector.broadcast %10 : i32 to vector<2x1xi32>
      %50 = arith.cmpi slt, %49, %1 : vector<2x1xi32>
      %51 = vector.shape_cast %50 : vector<2x1xi1> to vector<2x1xi1>
      %52 = vector.broadcast %51 : vector<2x1xi1> to vector<2x32xi1>
      %53 = arith.select %52, %48, %11 : vector<2x32xi1>, vector<2x32xf32>
      %c0_31 = arith.constant 0 : index
      %c0_32 = arith.constant 0 : index
      %54 = vector.load %arg5[%c0_31, %c0_32] : memref<2x32xf32, #tpu.memory_space<vmem>>, vector<2x32xf32>
      tpu.vector_store %arg5[%c0_31, %c0_32], %53 {strides = array<i32>} : memref<2x32xf32, #tpu.memory_space<vmem>>, vector<2x32xf32>,
      %55 = vector.shape_cast %50 : vector<2x1xi1> to vector<2x1xi1>
      %56 = vector.broadcast %55 : vector<2x1xi1> to vector<2x32xi1>
      %57 = arith.select %56, %46, %12 : vector<2x32xi1>, vector<2x32xf32>
      %c0_33 = arith.constant 0 : index
      %c0_34 = arith.constant 0 : index
      %58 = vector.load %arg6[%c0_33, %c0_34] : memref<2x32xf32, #tpu.memory_space<vmem>>, vector<2x32xf32>
      tpu.vector_store %arg6[%c0_33, %c0_34], %57 {strides = array<i32>} : memref<2x32xf32, #tpu.memory_space<vmem>>, vector<2x32xf32>,
    }
    %c8_i32_8 = arith.constant 8 : i32
    %c0_9 = arith.constant 0 : index
    %c0_10 = arith.constant 0 : index
    %7 = vector.load %arg6[%c0_9, %c0_10] : memref<2x32xf32, #tpu.memory_space<vmem>>, vector<2x32xf32>
    %c0_11 = arith.constant 0 : index
    %c0_12 = arith.constant 0 : index
    %8 = vector.load %arg4[%c0_11, %c0_12] : memref<2x32xf32, #tpu.memory_space<vmem>>, vector<2x32xf32>
    tpu.vector_store %arg4[%c0_11, %c0_12], %7 {strides = array<i32>} : memref<2x32xf32, #tpu.memory_space<vmem>>, vector<2x32xf32>,
    return
  }
  func.func @transform_0(%arg0: i32) -> (i32, i32, i32) {
    %c0_i32 = arith.constant 0 : i32
    %c0_i32_0 = arith.constant 0 : i32
    %c0_i32_1 = arith.constant 0 : i32
    %c0_i32_2 = arith.constant 0 : i32
    return %c0_i32, %c0_i32_0, %c0_i32_1 : i32, i32, i32
  }
  func.func @transform_1(%arg0: i32) -> (i32, i32) {
    %c0_i32 = arith.constant 0 : i32
    %c0_i32_0 = arith.constant 0 : i32
    %c0_i32_1 = arith.constant 0 : i32
    return %c0_i32, %c0_i32_0 : i32, i32
  }
  func.func @transform_2(%arg0: i32) -> (i32, i32) {
    %c0_i32 = arith.constant 0 : i32
    %c0_i32_0 = arith.constant 0 : i32
    %c0_i32_1 = arith.constant 0 : i32
    return %c0_i32, %c0_i32_0 : i32, i32
  }
  func.func @transform_3(%arg0: i32) -> (i32, i32) {
    %c0_i32 = arith.constant 0 : i32
    %c0_i32_0 = arith.constant 0 : i32
    %c0_i32_1 = arith.constant 0 : i32
    return %c0_i32, %c0_i32_0 : i32, i32
  }
}

</mosaic_0001>

<bundles_post_ra>
// kernel: tpu_custom_call.1
= control target key start
LH: loop header
LB: loop body
LE: loop exit
PB: predicated region body
PF: predicated region fallthrough
CT: control target
= control target key end

     0   :  { %8 = vsyncpa [#allocation5], 0  ;;  %s378_s0 = inlined_call_operand.hbm [shape: f32[8,2,128], index: 0, kind: input, shape index: {}]   ;;  %s379_s1 = inlined_call_operand.hbm [shape: f32[32,128], index: 1, kind: input, shape index: {}]   ;;  %s380_s2 = inlined_call_operand.vmem [shape: s32[2,1], index: 2, kind: input, shape index: {}]   ;;  %s381_s3 = inlined_call_operand.hbm [shape: f32[2,32], index: 3, kind: output, shape index: {}]  }
   0x1   :  { %9 = vsyncpa [#allocation8], 0 }
   0x2   :  { %10 = vsyncpa [#allocation6], 0  ;;  %s15_s14 = sshll.u32 %s378_s0, 4  ;;  %s299_s15 = smov [#allocation4]   ;;  %s16_s14 = int_to_ptr.hbm [resolvable:$true] %s15_s14 }
   0x3   :  { %s17_s16 = sshll.u32 %s299_s15, 4  ;;  %s28_s19 = sshll.u32 %s379_s1, 4  ;;  %s18_s16 = int_to_ptr.vmem [resolvable:$true] %s17_s16  ;;  %s29_s19 = int_to_ptr.hbm [resolvable:$true] %s28_s19 }
   0x4   :  { %s300_s20 = smov 32   ;;  %s301_s21 = smov 2  }
   0x5   :  { %23 = dma.hbm_to_vmem [thread:$0]  %s16_s14, 256, %s18_s16, [#allocation5], %s300_s20, %s300_s20, %s301_s21  }
   0x6   :  { %s302_s22 = smov [#allocation7]   ;;  %s303_s24 = smov 128  }
   0x7   :  { %s30_s23 = sshll.u32 %s302_s22, 4  ;;  %s304_s25 = smov 8   ;;  %s31_s23 = int_to_ptr.vmem [resolvable:$true] %s30_s23 }
   0x8   :  { %36 = dma.hbm_to_vmem [thread:$0]  %s29_s19, 512, %s31_s23, [#allocation8], %s303_s24, %s303_s24, %s304_s25  }
   0x9   :  { %289 = dma.done.wait [#allocation5], 256  }
   0xa   :  { %290 = vsyncadd [#allocation5], 4294967040 }
   0xb   :  { %291 = dma.done.wait [#allocation8], 512  }
   0xc   :  { %292 = vsyncadd [#allocation8], 4294966784  ;;  %vm52_vm0 = vcmask 254976   ;;  %v305_v0 = vmov 0.0   ;;  %v339_v1 = vld [vmem:[#allocation7] sm:$0xff]  ;;  %v341_v2 = vld [vmem:[#allocation7 + $0x8] sm:$0xff] }
   0xd   :  { %53 = vst.msk [vmem:[#allocation2] sm:$0x3] %vm52_vm0, %v305_v0  ;;  %v343_v3 = vld [vmem:[#allocation7 + $0x10] sm:$0xff]  ;;  %v345_v4 = vld [vmem:[#allocation7 + $0x18] sm:$0xff]  ;;  %v350_v5 = vld [vmem:[%s380_s2] sm:$0x3] }
   0xe   :  { %54 = vst.msk [vmem:[#allocation3] sm:$0x3] %vm52_vm0, %v305_v0  ;;  %s352_s26 = smov 0  }
   0xf LB: > { %82 = vmatpush.msra.mxu0 %v345_v4  ;;  %vm66_vm1 = vcmask 261120   ;;  %s181_s2 = sshll.u32 %s297_s26, 1  ;;  %s306_s28 = smov 64   ;;  %v132_v16 = vstv %s297_s26  ;;  %v308_v18 = vmov 0   ;;  %s297_s26 = sphi %s352_s26, %s60_s26  }
  0x10   : > { %s64_s27 = scalar_lea.vmem [#allocation4], %s181_s2  ;;  %s307_s29 = smov 32   ;;  %203 = vset.pattern.permute.xlu2 %v308_v18  ;;  %vm133_vm2 = vcmp.lt.s32.totalorder %v132_v16, %v350_v5  ;;  %204 = vset.pattern.permute.xlu0 %v308_v18 }
  0x11   : > { %83 = vmatpush.msra.mxu0 %v343_v3  ;;  %v65_v7 = vld [vmem:[%s64_s27] sm:$0x3]  ;;  %v134_v19 = vsel %vm133_vm2, 1, %v308_v18  ;;  %s309_s30 = smov 96   ;;  %s60_s26 = sadd.s32 1, %s297_s26  }
  0x12   : > { %136 = vperm.xlu2 %203, %v134_v19   ;;  %p57_p0 = scmp.ge.s32.totalorder %s60_s26, 8  }
  0x13   : > { %84 = vmatpush.msra.mxu0 %v341_v2  ;;  %s163_s6 = sshll.u32 (%p57_p0), %s381_s3, 4  ;;  %s310_s7 = smov (%p57_p0), [#allocation9]   ;;  %s164_s6 = int_to_ptr.hbm [resolvable:$true] %s163_s6 }
  0x14   : > { %v61_v6 = vld [vmem:[#allocation2] sm:$0x3]  ;;  %s161_s8 = sshll.u32 (%p57_p0), %s310_s7, 4  ;;  %s162_s8 = int_to_ptr.vmem [resolvable:$true] %s161_s8 }
  0x15   : > { %85 = vmatpush.msra.mxu0 %v339_v1  ;;  %v62_v11 = vld [vmem:[#allocation3] sm:$0x3] }
  0x16   : > { %182 = vmatmul.msk.f32.vlgmr.msra.gmra.mxu0 %vm66_vm1, %v61_v6 }
  0x1a   : > { %139 = vrot.lane.b32.xlu2 %v61_v6, %s309_s30 }
  0x6c   : > { %v137_v36 = vpop.permute.xlu2 %136 }
  0x6d   : > { %vm138_vm7 = vcmp.eq.s32.totalorder %v137_v36, 1 }
  0x74   : > { %v140_v39 = vpop.permute.xlu2 %139 }
  0x93   : > { %v87_v8 = vpop.f32.mrf.mxu0 }
  0x94   : > { %v90_v9 = vadd.f32 %v87_v8, %v65_v7 }
  0x96   : > { %205 = vtanh.f32 %v90_v9  ;;  %v91_v12 = vsub.f32 0.0, %v90_v9 }
  0x98   : > { %v92_v13 = vmul.f32 1.442695, %v91_v12 }
  0x9a   : > { %207 = vpow2.f32 %v92_v13 }
  0x9c   : > { %v206_v10 = vpop.eup %205 }
  0x9d   : > { %117 = vrot.lane.b32.xlu0 %v206_v10, %s306_s28 }
  0xa0   : > { %v208_v14 = vpop.eup %207 }
  0xa1   : > { %v94_v15 = vadd.f32 1.0, %v208_v14 }
  0xa3   : > { %209 = vrcp.f32 %v94_v15  ;;  %v106_v24 = vand.u32 2147483648, %v94_v15  ;;  %vm100_vm4 = vweird.f32 %v94_v15  ;;  %v104_v25 = vand.u32 2147483647, %v94_v15 }
  0xa5   : > { %112 = vrot.lane.b32.xlu0 %v62_v11, %s307_s29  ;;  %v107_v27 = vor.u32 1.1754944e-38, %v106_v24  ;;  %vm105_vm6 = vcmp.eq.f32.partialorder %v104_v25, 8.507059e+37 }
  0xa9   : > { %v210_v17 = vpop.eup %209 }
  0xaa   : > { %v96_v20 = vmul.f32 %v210_v17, %v94_v15  ;;  %vm101_vm3 = vweird.f32 %v210_v17 }
  0xab   : > { %vm102_vm5 = vmor %vm100_vm4, %vm101_vm3 }
  0xac   : > { %v97_v21 = vsub.f32 1.0, %v96_v20 }
  0xae   : > { %v98_v22 = vmul.f32 %v210_v17, %v97_v21 }
  0xb0   : > { %v99_v23 = vadd.f32 %v210_v17, %v98_v22 }
  0xb2   : > { %v103_v26 = vsel %vm102_vm5, %v210_v17, %v99_v23 }
  0xb3   : > { %v108_v29 = vsel %vm105_vm6, %v107_v27, %v103_v26 }
 0x10f   : > { %v118_v28 = vpop.permute.xlu0 %117 }
 0x110   : > { %v120_v30 = vmul.f32 %v118_v28, %v108_v29 }
 0x112   : > { %122 = vrot.lane.b32.xlu1 %v120_v30, %s307_s29 }
 0x117   : > { %v113_v31 = vpop.permute.xlu0 %112 }
 0x118   : > { %v115_v32 = vmul.f32 %v113_v31, %v108_v29 }
 0x184   : > { %v123_v33 = vpop.permute.xlu1 %122 }
 0x185   : > { %v125_v34 = vadd.f32 %v123_v33, %v115_v32 }
 0x187   : > { %211 = vtanh.f32 %v125_v34  ;;  %v148_v37 = vsel %vm138_vm7, %v125_v34, %v113_v31 }
 0x18d   : > { %v212_v35 = vpop.eup %211 }
 0x18e   : > { %128 = vrot.lane.b32.xlu1 %v212_v35, %s306_s28 }
 0x196   : > { %150 = vrot.lane.b32.xlu1 %v148_v37, %s309_s30 }
 0x200   : > { %v129_v38 = vpop.permute.xlu1 %128 }
 0x201   : > { %v131_v40 = vmul.f32 %v129_v38, %v108_v29 }
 0x203   : > { %v142_v41 = vsel %vm138_vm7, %v131_v40, %v140_v39 }
 0x204   : > { %144 = vrot.lane.b32.xlu0 %v142_v41, %s307_s29 }
 0x208   : > { %v151_v42 = vpop.permute.xlu1 %150 }
 0x209   : > { %153 = vst.msk [vmem:[#allocation3] sm:$0x3] %vm52_vm0, %v151_v42 }
 0x210   :  { %v154_v44 = vld [vmem:[#allocation3] sm:$0x3] (%p57_p0) }
 0x211   :  { %155 = vst.msk [vmem:[#allocation9] sm:$0x3] (%p57_p0), %vm52_vm0, %v154_v44 }
 0x212   :  { %166 = dma.vmem_to_hbm [thread:$0]  (%p57_p0), %s162_s8, 32, %s164_s6, [#allocation6]  }
 0x273   :  { %59 = sbr.rel (!%p57_p0) target bundleno = 15 (0xf), region = 48 }
 0x276   : > { %v145_v43 = vpop.permute.xlu0 %144 }
 0x277   : > { %147 = vst.msk [vmem:[#allocation2] sm:$0x3] %vm52_vm0, %v145_v43 }
 0x278   :  { %293 = dma.done.wait [#allocation6], 32  }
 0x279   :  { %294 = vsyncadd [#allocation6], 4294967264 }
 0x27a   :  { %171 = vsyncpa [#allocation5], 1 }
 0x27b   :  { %172 = vsyncpa [#allocation8], 1 }
 0x27c   :  { %173 = vsyncpa [#allocation6], 1 }

</bundles_post_ra>
